<compile_context>
chip_gen: v6e
topology: v6e:2x2x1
jax: 0.10.0
libtpu: 0.0.40
codegen_flags: <defaults>
</compile_context>

<pallas_src>
import functools

import jax
import jax.numpy as jnp
from jax import lax
from jax.experimental import pallas as pl
from jax.experimental.pallas import tpu as pltpu


def _normalize_kernel(x_ref, o_ref, *, power: float):
    """One (row_tile, D) block: per-row L-p normalization, entirely in VMEM."""
    x = x_ref[...].astype(jnp.float32)

    p_is_int = float(power) == int(power)
    p_int = int(power) if p_is_int else None

    if p_int == 2:
        # Fast path: square on the VPU, one rsqrt per row on the EUP.
        s = jnp.sum(x * x, axis=1, keepdims=True)
        scale = lax.rsqrt(s)
    elif p_int == 1:
        s = jnp.sum(x, axis=1, keepdims=True)
        scale = pl.reciprocal(s, approx=False)
    elif p_int is not None and 1 < p_int <= 8:
        # Repeated multiplies (VPU, sign-correct for odd powers) + one fused
        # transcendental per row.
        xp = x
        for _ in range(p_int - 1):
            xp = xp * x
        s = jnp.sum(xp, axis=1, keepdims=True)
        scale = jnp.power(s, jnp.float32(-1.0 / p_int))
    else:
        # Generic float-power fallback: two transcendentals fused into one scale.
        s = jnp.sum(jnp.power(x, jnp.float32(power)), axis=1, keepdims=True)
        scale = jnp.power(s, jnp.float32(-1.0 / power))

    o_ref[...] = (x * scale).astype(o_ref.dtype)


def _pick_row_tile(n: int, d: int, itemsize: int) -> int:
    """Largest row tile that (a) respects sublane packing, (b) fits a conservative
    per-step VMEM budget (double-buffered in + out + f32 temporaries), and
    (c) leaves >= 2 grid steps when possible (v7x megacore sharding)."""
    pack = {1: 32, 2: 16}.get(itemsize, 8)
    if n <= pack:
        return n  # full-extent block is always a legal block shape

    # Per-row bytes: 2x double-buffered input + 2x double-buffered output
    # (4 * itemsize) plus ~3 f32-sized temporaries (cast / power / scaled out).
    per_row = d * (4 * itemsize + 3 * 4)
    budget = 24 << 20  # keeps double-buffering comfortably inside v7x's 64 MiB VMEM
    tile = max(pack, min(1024, (budget // max(per_row, 1)) // pack * pack))

    # Prefer >= 2 grid steps so the parallel axis can shard across v7x's 2 TCs.
    if n >= 2 * pack:
        half = -(-n // 2)
        half = -(-half // pack) * pack
        tile = min(tile, half)

    return min(tile, n)


def normalize(x: jax.Array, power: int = 2, *, row_tile: int | None = None) -> jax.Array:
    """L-p normalization across axis 1, identical to the PyTorch Normalize module."""
    n, d = x.shape
    itemsize = jnp.dtype(x.dtype).itemsize
    if row_tile is None:
        row_tile = _pick_row_tile(n, d, itemsize)
    row_tile = min(row_tile, n)

    grid = (pl.cdiv(n, row_tile),)
    kernel = functools.partial(_normalize_kernel, power=float(power))

    cost = pl.CostEstimate(
        flops=3 * n * d,                 # power + reduce-add + scale-multiply
        transcendentals=n,               # one rsqrt / pow per row
        bytes_accessed=2 * n * d * itemsize,
    )

    return pl.pallas_call(
        kernel,
        out_shape=jax.ShapeDtypeStruct((n, d), x.dtype),
        grid_spec=pltpu.PrefetchScalarGridSpec(
            num_scalar_prefetch=0,
            grid=grid,
            in_specs=[pl.BlockSpec((row_tile, d), lambda i: (i, 0))],
            out_specs=pl.BlockSpec((row_tile, d), lambda i: (i, 0)),
        ),
        compiler_params=pltpu.CompilerParams(
            dimension_semantics=("parallel",),
            vmem_limit_bytes=48 << 20,   # > default scoped limit on v5e/v6e, < v7x physical
        ),
        cost_estimate=cost,
    )(x)


def _reference(x: jnp.ndarray, power: int = 2) -> jnp.ndarray:
    norm = jnp.power(jnp.sum(jnp.power(x, power), axis=1, keepdims=True), 1.0 / power)
    return x / norm


if __name__ == "__main__":
    key = jax.random.PRNGKey(0)
    # Small (batch, feature) shape consistent with the module's usage in selavi.
    x = jax.random.normal(key, (16, 32), dtype=jnp.float32)

    out = normalize(x, power=2)
    out = jax.block_until_ready(out)

    ref = _reference(x, power=2)
    assert out.shape == x.shape and out.dtype == x.dtype
    assert jnp.allclose(out, ref, atol=1e-5, rtol=1e-5), "mismatch vs reference"

    print("KERNEL_OK")
</pallas_src>

<mosaic_0001>
module attributes {stable_mosaic.version = 11 : i64} {
  func.func @_normalize_kernel(%arg0: i32, %arg1: memref<8x32xf32, #tpu.memory_space<vmem>>, %arg2: memref<8x32xf32, #tpu.memory_space<vmem>>) attributes {dimension_semantics = [#tpu.dimension_semantics<parallel>], iteration_bounds = array<i64: 2>, scalar_prefetch = 0 : i64, scratch_operands = 0 : i64, tpu.core_type = #tpu.core_type<tc>, window_params = [{transform_indices = @transform_0, window_bounds = array<i64: 8, 32>}, {transform_indices = @transform_1, window_bounds = array<i64: 8, 32>}]} {
    %c0 = arith.constant 0 : index
    %c0_0 = arith.constant 0 : index
    %0 = vector.load %arg1[%c0, %c0_0] : memref<8x32xf32, #tpu.memory_space<vmem>>, vector<8x32xf32>
    %1 = arith.mulf %0, %0 : vector<8x32xf32>
    %cst = arith.constant dense<0.000000e+00> : vector<8xf32>
    %2 = vector.multi_reduction <add>, %1, %cst [1] : vector<8x32xf32> to vector<8xf32>
    %3 = vector.shape_cast %2 : vector<8xf32> to vector<8x1xf32>
    %4 = math.rsqrt %3 : vector<8x1xf32>
    %5 = vector.broadcast %4 : vector<8x1xf32> to vector<8x32xf32>
    %6 = arith.mulf %0, %5 : vector<8x32xf32>
    %c0_1 = arith.constant 0 : index
    %c0_2 = arith.constant 0 : index
    %7 = vector.load %arg2[%c0_1, %c0_2] : memref<8x32xf32, #tpu.memory_space<vmem>>, vector<8x32xf32>
    tpu.vector_store %arg2[%c0_1, %c0_2], %6 {strides = array<i32>} : memref<8x32xf32, #tpu.memory_space<vmem>>, vector<8x32xf32>,
    return
  }
  func.func @transform_0(%arg0: i32) -> (i32, i32) {
    %c0_i32 = arith.constant 0 : i32
    %c0_i32_0 = arith.constant 0 : i32
    return %arg0, %c0_i32 : i32, i32
  }
  func.func @transform_1(%arg0: i32) -> (i32, i32) {
    %c0_i32 = arith.constant 0 : i32
    %c0_i32_0 = arith.constant 0 : i32
    return %arg0, %c0_i32 : i32, i32
  }
}

</mosaic_0001>

<bundles_post_ra>
// kernel: tpu_custom_call.1
= control target key start
LH: loop header
LB: loop body
LE: loop exit
PB: predicated region body
PF: predicated region fallthrough
CT: control target
= control target key end

     0   :  { %6 = vsyncpa [#allocation3], 0  ;;  %s532_s0 = inlined_call_operand.hbm [shape: f32[16,32], index: 0, kind: input, shape index: {}]   ;;  %s533_s1 = inlined_call_operand.hbm [shape: f32[16,32], index: 1, kind: output, shape index: {}]  }
   0x1   :  { %8 = vsyncpa [#allocation3 + $0x1], 0 }
   0x2   :  { %9 = vsyncpa [#allocation4], 0 }
   0x3   :  { %11 = vsyncpa [#allocation4 + $0x1], 0  ;;  %s391_s6 = smov 0   ;;  %s393_s7 = smov 0  }
   0x4   :  { %s395_s8 = smov 0   ;;  %s397_s9 = smov 0  }
   0x5 LB: > { %s412_s10 = sadd.s32 4294967295, %s377_s9   ;;  %s225_s11 = sadd.s32 4294967294, %s377_s9   ;;  %s377_s9 = sphi %s397_s9, %s550_s9   ;;  %s373_s8 = sphi %s395_s8, %s549_s8   ;;  %s369_s7 = sphi %s393_s7, %s548_s7   ;;  %s365_s6 = sphi %s391_s6, %s547_s6  }
   0x6   : > { %s416_s12 = sadd.s32 1, %s377_s9   ;;  %s24_s13 = sadd.s32 1, %s373_s8 }
   0x7   : > { %s21_s14 = ssub.s32 %s377_s9, %s416_s12  ;;  %p31_p0 = scmp.ne.s32.totalorder %s373_s8, %s369_s7 }
   0x8   : > { %p22_p1 = scmp.eq.s32.totalorder %s21_s14, 0  ;;  %p32_p2 = scmp.eq.s32.totalorder %s377_s9, 0 }
   0x9   : > { %p37_p3 = scmp.ne.s32.totalorder %s369_s7, %s365_s6  ;;  %p38_p4 = scmp.eq.s32.totalorder %s412_s10, 0 }
   0xa   : > { %s428_s15 = scalar_select %p22_p1, %s373_s8, %s24_s13  }
   0xb   : > { %p430_p5 = por %p32_p2, %p31_p0  ;;  %p434_p6 = por %p38_p4, %p37_p3 }
   0xc   : > { %p61_p7 = scmp.eq.s32.totalorder %s412_s10, 1  ;;  %p67_p8 = scmp.eq.s32.totalorder %s225_s11, 1 }
   0xd   : > { %s537_s17 = scalar_select %p434_p6, 1, 0 }
   0xe   : > { %p249_p10 = scmp.lt.s32.totalorder %s377_s9, 2  ;;  %p441_p11 = por %p61_p7, %p31_p0 }
   0xf   : > { %p445_p12 = por %p67_p8, %p37_p3  ;;  %s87_s20 = sand.u32 1, %s373_s8  }
  0x10   : > { %s538_s18 = scalar_select %p441_p11, 1, 0 }
  0x11   : > { %s539_s19 = scalar_select %p445_p12, 1, 0 }
  0x12   : > { %s229_s21 = sshll.u32 %s377_s9, 7  ;;  %s228_s22 = sshll.u32 %s87_s20, 3 }
  0x13   : > { %s454_s25 = scalar_lea.hbm %s532_s0, %s229_s21  ;;  %s91_s26 = scalar_lea.vmem [#allocation2], %s228_s22 }
  0x14   : > { %s98_s27 = sshll.u32 %s91_s26, 4  ;;  %p458_p13 = pnand %p249_p10, %p430_p5  ;;  %s462_s27 = int_to_ptr.vmem [resolvable:$true] %s98_s27 }
  0x15   : > { %s88_s29 = scalar_lea.sflag [#allocation3], %s87_s20  ;;  %s285_s30 = scalar_lea.hbm %s454_s25, 128 }
  0x16   : > { %p286_p2 = scmp.ne.s32.totalorder %s454_s25, %s285_s30  ;;  %p287_p3 = pneg %p458_p13 }
  0x17   : > { %s290_s4 = scalar_lea.hbm %s532_s0, 256  ;;  %p291_p5 = scmp.lt.s32.totalorder %s454_s25, %s532_s0 }
  0x18   : > { %p288_p4 = pnand %p287_p3, %p286_p2  ;;  %p292_p8 = scmp.lt.s32.totalorder %s290_s4, %s285_s30 }
  0x1a   : > { %p289_p7 = pneg %p288_p4  ;;  %p293_p10 = por %p292_p8, %p291_p5 }
  0x1c   : > { %p294_p9 = pnand %p293_p10, %p289_p7 }
  0x1e   : > { %297 = shalt.err (!%p294_p9)
}
  0x1f   : > { %s298_s13 = scalar_lea.vmem %s462_s27, 128  ;;  %s379_s14 = smov [#allocation2]  }
  0x20   : > { %p299_p0 = scmp.ne.s32.totalorder %s462_s27, %s298_s13  ;;  %s303_s16 = sshll.u32 %s379_s14, 4  ;;  %s304_s16 = int_to_ptr.vmem [resolvable:$false] %s303_s16 }
  0x21   : > { %s305_s20 = scalar_lea.vmem %s304_s16, 256  ;;  %p306_p4 = scmp.lt.s32.totalorder %s462_s27, %s304_s16 }
  0x22   : > { %p301_p1 = pnand %p299_p0, %p287_p3  ;;  %p307_p12 = scmp.lt.s32.totalorder %s305_s20, %s298_s13 }
  0x24   : > { %p302_p2 = pneg %p301_p1  ;;  %p308_p11 = por %p307_p12, %p306_p4 }
  0x26   : > { %p309_p6 = pnand %p308_p11, %p302_p2 }
  0x28   : > { %312 = shalt.err (!%p309_p6)
}
  0x29   : > { %244 = dma.hbm_to_vmem [thread:$0]  (!%p458_p13), %s454_s25, 128, %s462_s27, %s88_s29  }
  0x2a   : > { %p541_p9 = scmp.lt.s32.totalorder %s377_s9, 3  ;;  %p542_p7 = scmp.ge.s32.totalorder %s377_s9, 1 }
  0x2c   : > { %p104_p0 = pnand %p542_p7, %p541_p9 }
  0x2d   : > { %s489_s21 = sand.u32 (!%p104_p0), 1, %s369_s7   ;;  %p543_p6 = scmp.ne.s32.totalorder (!%p104_p0), %s537_s17, 0 }
  0x2e   : > { %107 = sbr.rel (%p104_p0) target bundleno = 223 (0xdf), region = 24  ;;  %s231_s22 = sshll.u32 (!%p104_p0), %s489_s21, 3 }
  0x2f   : > { %s110_s23 = scalar_lea.sflag (!%p104_p0), [#allocation3], %s489_s21  ;;  %s113_s24 = scalar_lea.vmem (!%p104_p0), [#allocation2], %s231_s22 }
  0x33   : > { %356 = dma.done.wait (%p543_p6), %s110_s23, 128  }
  0x34   : > { %358 = vsyncadd (%p543_p6), %s110_s23, 4294967168  ;;  %v132_v0 = vld [vmem:[%s113_s24] sm:$0xff]  ;;  %vm134_vm0 = vcmask 261120   ;;  %s234_s25 = sshll.u32 %s412_s10, 7  ;;  %s131_s26 = scalar_lea.vmem [#allocation5], %s231_s22 }
  0x35   : > { %v133_v1 = vmul.f32 %v132_v0, %v132_v0  ;;  %s155_s27 = sshll.u32 %s131_s26, 4  ;;  %s153_s17 = scalar_lea.hbm %s533_s1, %s234_s25  ;;  %s156_s27 = int_to_ptr.vmem [resolvable:$true] %s155_s27 }
  0x36   : > { %s142_s30 = scalar_lea.sflag [#allocation4], %s489_s21  ;;  %s313_s2 = scalar_lea.vmem %s156_s27, 128 }
  0x37   : > { %v135_v2 = vsel %vm134_vm0, %v133_v1, 0.0  ;;  %p314_p11 = scmp.ne.s32.totalorder %s156_s27, %s313_s2  ;;  %p544_p12 = scmp.ne.s32.totalorder %s538_s18, 0 }
  0x38   : > { %136 = vadd.xlane.f32.xlu0 %v135_v2  ;;  %s380_s3 = smov [#allocation5]  }
  0x39   : > { %p315_p13 = pnand %p314_p11, %p544_p12  ;;  %s317_s4 = sshll.u32 %s380_s3, 4  ;;  %s318_s4 = int_to_ptr.vmem [resolvable:$false] %s317_s4 }
  0x3a   : > { %s319_s10 = scalar_lea.vmem %s318_s4, 256  ;;  %p320_p3 = scmp.lt.s32.totalorder %s156_s27, %s318_s4 }
  0x3b   : > { %p316_p1 = pneg %p315_p13  ;;  %p321_p5 = scmp.lt.s32.totalorder %s319_s10, %s313_s2 }
  0x3d   : > { %p322_p8 = por %p321_p5, %p320_p3 }
  0x3f   : > { %p323_p10 = pnand %p322_p8, %p316_p1 }
  0xc1   : > { %v137_v3 = vpop.xlane.xlu0 %136 }
  0xc2   : > { %283 = vrsqrt.f32 %v137_v3 }
  0xcf   : > { %v284_v4 = vpop.eup %283 }
  0xd0   : > { %v139_v5 = vmul.f32 %v284_v4, %v132_v0 }
  0xd2   : > { %140 = vst.msk [vmem:[%s131_s26] sm:$0xff] %vm134_vm0, %v139_v5 }
  0xd3   : > { %326 = shalt.err (!%p323_p10)
}
  0xd4   : > { %s327_s5 = scalar_lea.hbm %s153_s17, 128  ;;  %s331_s14 = scalar_lea.hbm %s533_s1, 256 }
  0xd5   : > { %p328_p2 = scmp.ne.s32.totalorder %s153_s17, %s327_s5  ;;  %p332_p7 = scmp.lt.s32.totalorder %s153_s17, %s533_s1 }
  0xd6   : > { %p333_p0 = scmp.lt.s32.totalorder %s331_s14, %s327_s5 }
  0xd7   : > { %p329_p4 = pnand %p328_p2, %p544_p12 }
  0xd8   : > { %p334_p6 = por %p333_p0, %p332_p7 }
  0xd9   : > { %p330_p9 = pneg %p329_p4 }
  0xdb   : > { %p335_p11 = pnand %p334_p6, %p330_p9 }
  0xdd   : > { %338 = shalt.err (!%p335_p11)
}
  0xde   : > { %239 = dma.vmem_to_hbm [thread:$0]  (%p544_p12), %s156_s27, 128, %s153_s17, %s142_s30  }
  0xdf PF: > { %s167_s21 = sand.u32 1, %s365_s6   ;;  %p545_p13 = scmp.ne.s32.totalorder %s539_s19, 0 }
  0xe0   : > { %p546_p1 = scmp.ge.s32.totalorder %s377_s9, 2  ;;  %s168_s22 = scalar_lea.sflag [#allocation4], %s167_s21 }
  0xe2   : > { %p246_p3 = pnand %p546_p1, %p545_p13 }
  0xe4   : > { %p247_p5 = pneg %p246_p3 }
  0xe6   : > { %360 = dma.done.wait (%p247_p5), %s168_s22, 128  }
  0xe7   : > { %362 = vsyncadd (%p247_p5), %s168_s22, 4294967168  ;;  %p14_p8 = scmp.ge.s32.totalorder %s416_s12, 4   ;;  %s547_s6 = smov %s369_s7 }
  0xe8   : > { %s548_s7 = smov %s373_s8  ;;  %s549_s8 = smov %s428_s15 }
  0xe9   : > { %s550_s9 = smov %s416_s12  ;;  %16 = sbr.rel (!%p14_p8) target bundleno = 5 (0x5), region = 69 }
  0xee   :  { %173 = vsyncpa [#allocation3], 1 }
  0xef   :  { %175 = vsyncpa [#allocation3 + $0x1], 1 }
  0xf0   :  { %176 = vsyncpa [#allocation4], 1 }
  0xf1   :  { %178 = vsyncpa [#allocation4 + $0x1], 1 }

</bundles_post_ra>
